<compile_context>
chip_gen: v5e
topology: v5e:2x2
jax: 0.10.0
libtpu: 0.0.40
codegen_flags: <defaults>
</compile_context>

<pallas_src>
import math
import jax
import jax.numpy as jnp
from jax.experimental import pallas as pl
from jax.experimental.pallas import tpu as pltpu


# ---------------------------------------------------------------------------
# Kernels
# ---------------------------------------------------------------------------
def _ffn_resident_kernel(x_ref, w1_ref, b1_ref, w2_ref, b2_ref, o_ref):
    """One row tile; both (padded) weight matrices fully resident in VMEM."""
    h = jnp.dot(x_ref[...], w1_ref[...], preferred_element_type=jnp.float32)
    h = jnp.maximum(h + b1_ref[...], 0.0)                      # bias + ReLU (f32)
    o = jnp.dot(h.astype(w2_ref.dtype), w2_ref[...],
                preferred_element_type=jnp.float32)
    o_ref[...] = (o + b2_ref[...]).astype(o_ref.dtype)
    # TODO(synk): training-mode dropout (pltpu.prng_*) omitted; nn.Dropout in
    # eval mode is the identity, which is what this implements.


def _ffn_htiled_kernel(x_ref, w1_ref, b1_ref, w2_ref, b2_ref, o_ref, acc_ref):
    """Grid = (row tiles, hidden tiles).  The hidden axis is a reduction for
    the second matmul: accumulate in an f32 VMEM scratch, write back on the
    last hidden tile."""
    h_idx = pl.program_id(1)

    @pl.when(h_idx == 0)
    def _():
        acc_ref[...] = jnp.zeros_like(acc_ref)

    h = jnp.dot(x_ref[...], w1_ref[...], preferred_element_type=jnp.float32)
    h = jnp.maximum(h + b1_ref[...], 0.0)
    acc_ref[...] += jnp.dot(h.astype(w2_ref.dtype), w2_ref[...],
                            preferred_element_type=jnp.float32)

    @pl.when(h_idx == pl.num_programs(1) - 1)
    def _():
        o_ref[...] = (acc_ref[...] + b2_ref[...]).astype(o_ref.dtype)


# ---------------------------------------------------------------------------
# Hardware introspection / helpers
# ---------------------------------------------------------------------------
def _round_up(n, m):
    return ((n + m - 1) // m) * m


def _tpu_generation():
    try:
        kind = jax.devices()[0].device_kind.lower()
    except Exception:
        return "unknown"
    if "v7" in kind:
        return "v7x"
    if "v6" in kind:
        return "v6e"
    if "v5 lite" in kind or "v5e" in kind or "v5lite" in kind:
        return "v5e"
    return "unknown"


def _vmem_capacity_bytes(gen):
    try:
        cap = int(getattr(pltpu.get_tpu_info(), "vmem_capacity_bytes", 0) or 0)
        if cap > 0:
            return cap
    except Exception:
        pass
    return (64 if gen == "v7x" else 128) * 1024 * 1024


# Row tiles: resident path fills the MXU height; streaming path is sized so
# per-step MXU time covers the streamed-weight DMA (ridge-point based).
_RESIDENT_TM = {"v5e": 128, "v6e": 256, "v7x": 256}
_STREAM_TM = {"v5e": 256, "v6e": 640, "v7x": 384}


def _pick_th(Hp, target):
    th = max(128, min(_round_up(max(target, 128), 128), Hp))
    th = (th // 128) * 128
    while Hp % th != 0:       # Hp is a multiple of 128, so this stops at >=128
        th -= 128
    return th


def _single_buffered_spec(shape, index_map):
    # Constant-index (grid-resident) operands gain nothing from double
    # buffering; single-buffer them to halve their VMEM footprint.
    try:
        return pl.BlockSpec(shape, index_map, pipeline_mode=pl.Buffered(1))
    except Exception:
        return pl.BlockSpec(shape, index_map)


# ---------------------------------------------------------------------------
# Parameter preparation (do this ONCE, not per forward call)
# ---------------------------------------------------------------------------
def prepare_ffn_params(w1, b1, w2, b2, compute_dtype=jnp.bfloat16):
    """Cast + zero-pad weights to lane-dense (x128) shapes once, up front."""
    D, H = w1.shape
    assert w2.shape == (H, D), "w2 must be (hidden_dim, in_dim)"
    cdt = jnp.dtype(compute_dtype)
    Dp, Hp = _round_up(D, 128), _round_up(H, 128)

    w1p = w1.astype(cdt)
    w2p = w2.astype(cdt)
    if (Dp, Hp) != (D, H):
        w1p = jnp.pad(w1p, ((0, Dp - D), (0, Hp - H)))
        w2p = jnp.pad(w2p, ((0, Hp - H), (0, Dp - D)))
    b1p = jnp.asarray(b1, jnp.float32).reshape(1, H)
    b2p = jnp.asarray(b2, jnp.float32).reshape(1, D)
    if Hp != H:
        b1p = jnp.pad(b1p, ((0, 0), (0, Hp - H)))
    if Dp != D:
        b2p = jnp.pad(b2p, ((0, 0), (0, Dp - D)))
    return dict(w1=w1p, b1=b1p, w2=w2p, b2=b2p,
                in_dim=D, hidden_dim=H, compute_dtype=cdt)


# ---------------------------------------------------------------------------
# Forward pass
# ---------------------------------------------------------------------------
def feed_forward_prepared(x, params, *, tm=None, th=512, force_h_tiling=False):
    """dropout(relu(x @ w1 + b1) @ w2 + b2), dropout in eval mode (identity)."""
    B, S, D = x.shape
    assert D == params["in_dim"]
    cdt = params["compute_dtype"]
    w1p, b1p, w2p, b2p = params["w1"], params["b1"], params["w2"], params["b2"]
    Dp, Hp = w1p.shape

    M = B * S
    out_dtype = x.dtype
    obytes = jnp.dtype(out_dtype).itemsize
    isz = jnp.dtype(cdt).itemsize
    sub = 16 if isz < 4 else 8                    # sublane pack for tile rows

    gen = _tpu_generation()
    vmem_cap = _vmem_capacity_bytes(gen)
    budget = int(vmem_cap * 0.75)                 # ~96 MiB v5e/v6e, ~48 MiB v7x

    # Row tile for the resident path.
    tm_res = tm if tm is not None else _RESIDENT_TM.get(gen, 256)
    tm_res = max(sub, _round_up(min(tm_res, _round_up(M, sub)), sub))
    # v7x: two TensorCores share the "parallel" row axis -> keep >= 2 row tiles
    # for small (decode-style) M.
    if gen == "v7x" and tm is None and M > sub:
        while _round_up(M, tm_res) // tm_res < 2 and tm_res > sub:
            tm_res = max(sub, _round_up(tm_res // 2, sub))

    # Row tile for the weight-streaming path (higher: hides weight DMA).
    tm_str = tm if tm is not None else _STREAM_TM.get(gen, 256)
    tm_str = max(sub, _round_up(min(tm_str, _round_up(M, sub)), sub))

    th = _pick_th(Hp, th)

    def resident_bytes(tm_):
        return ((Dp * Hp + Hp * Dp) * isz              # weights (1 buffer)
                + (Hp + Dp) * 4                        # biases (1 buffer)
                + 2 * tm_ * Dp * isz                   # x tile (2 buffers)
                + 2 * tm_ * Dp * obytes                # out tile (2 buffers)
                + tm_ * Hp * 4 + tm_ * Hp * isz        # h f32 + bf16 cast copy
                + tm_ * Dp * 4)                        # o f32

    def htiled_bytes(tm_, th_):
        return (2 * (Dp * th_ + th_ * Dp) * isz        # W1 / W2 tiles (2 bufs)
                + 2 * (th_ + Dp) * 4                   # bias tiles
                + 2 * tm_ * Dp * isz + 2 * tm_ * Dp * obytes
                + tm_ * Dp * 4                         # accumulator scratch
                + tm_ * th_ * 4 + tm_ * th_ * isz      # h f32 + cast copy
                + tm_ * Dp * 4)                        # matmul result f32

    use_resident = (not force_h_tiling) and (resident_bytes(tm_res) <= budget)

    if use_resident:
        tm_ = tm_res
        vmem_need = resident_bytes(tm_)
    else:
        tm_ = tm_str
        while htiled_bytes(tm_, th) > budget and th > 128:
            th = _pick_th(Hp, max(128, th // 2))
        while htiled_bytes(tm_, th) > budget and tm_ > sub:
            tm_ = max(sub, _round_up(tm_ // 2, sub))
        vmem_need = htiled_bytes(tm_, th)

    Mp = _round_up(M, tm_)

    # Only x is padded/cast per call; weights were prepared once.
    x2 = x.reshape(M, D).astype(cdt)
    if Mp != M or Dp != D:
        x2 = jnp.pad(x2, ((0, Mp - M), (0, Dp - D)))

    # Never request more scoped VMEM than the chip physically has.
    vmem_limit = min(max(int(vmem_need * 1.3), 32 * 1024 * 1024),
                     int(vmem_cap * 0.90))

    def _run(single_buffer_weights):
        if use_resident:
            wspec = _single_buffered_spec if single_buffer_weights else pl.BlockSpec
            grid = (Mp // tm_,)
            in_specs = [
                pl.BlockSpec((tm_, Dp), lambda i: (i, 0)),   # x rows tile
                wspec((Dp, Hp), lambda i: (0, 0)),           # W1 (resident)
                wspec((1, Hp), lambda i: (0, 0)),            # b1
                wspec((Hp, Dp), lambda i: (0, 0)),           # W2 (resident)
                wspec((1, Dp), lambda i: (0, 0)),            # b2
            ]
            out_spec = pl.BlockSpec((tm_, Dp), lambda i: (i, 0))
            scratch = []
            kernel = _ffn_resident_kernel
            semantics = ("parallel",)
        else:
            grid = (Mp // tm_, Hp // th)
            in_specs = [
                pl.BlockSpec((tm_, Dp), lambda i, h: (i, 0)),  # x tile (reused)
                pl.BlockSpec((Dp, th), lambda i, h: (0, h)),   # W1 column tile
                pl.BlockSpec((1, th), lambda i, h: (0, h)),    # b1 tile
                pl.BlockSpec((th, Dp), lambda i, h: (h, 0)),   # W2 row tile
                pl.BlockSpec((1, Dp), lambda i, h: (0, 0)),    # b2
            ]
            out_spec = pl.BlockSpec((tm_, Dp), lambda i, h: (i, 0))
            scratch = [pltpu.VMEM((tm_, Dp), jnp.float32)]
            kernel = _ffn_htiled_kernel
            semantics = ("parallel", "arbitrary")

        return pl.pallas_call(
            kernel,
            out_shape=jax.ShapeDtypeStruct((Mp, Dp), out_dtype),
            grid_spec=pltpu.PrefetchScalarGridSpec(
                num_scalar_prefetch=0,
                grid=grid,
                in_specs=in_specs,
                out_specs=out_spec,
                scratch_shapes=scratch,
            ),
            compiler_params=pltpu.CompilerParams(
                dimension_semantics=semantics,
                vmem_limit_bytes=vmem_limit,
            ),
        )(x2, w1p, b1p, w2p, b2p)

    if use_resident:
        try:
            out = _run(True)
        except Exception:
            out = _run(False)    # fall back to default double-buffered weights
    else:
        out = _run(False)

    return out[:M, :D].reshape(B, S, D)


def feed_forward(x, w1, b1, w2, b2, *, tm=None, th=512,
                 compute_dtype=jnp.bfloat16, force_h_tiling=False):
    """Convenience wrapper that prepares params per call (prefer
    prepare_ffn_params + feed_forward_prepared for repeated calls)."""
    params = prepare_ffn_params(w1, b1, w2, b2, compute_dtype=compute_dtype)
    return feed_forward_prepared(x, params, tm=tm, th=th,
                                 force_h_tiling=force_h_tiling)


def init_linear(key, fan_in, fan_out, dtype=jnp.float32):
    # matches torch.nn.Linear default: U(-1/sqrt(fan_in), 1/sqrt(fan_in))
    kw, kb = jax.random.split(key)
    bound = 1.0 / math.sqrt(fan_in)
    w = jax.random.uniform(kw, (fan_in, fan_out), dtype, minval=-bound, maxval=bound)
    b = jax.random.uniform(kb, (1, fan_out), dtype, minval=-bound, maxval=bound)
    return w, b


if __name__ == "__main__":
    key = jax.random.PRNGKey(0)
    k_x, k_l1, k_l2, k_x2, k_l3, k_l4 = jax.random.split(key, 6)

    # --- Test 1: small shapes, f32 compute, resident path -------------------
    batch, seq, in_dim, hidden_dim = 2, 8, 32, 64
    x = jax.random.normal(k_x, (batch, seq, in_dim), jnp.float32)
    w1, b1 = init_linear(k_l1, in_dim, hidden_dim)
    w2, b2 = init_linear(k_l2, hidden_dim, in_dim)

    y = feed_forward(x, w1, b1, w2, b2, compute_dtype=jnp.float32)
    jax.block_until_ready(y)
    ref = (jnp.maximum(x.reshape(-1, in_dim) @ w1 + b1, 0.0) @ w2 + b2)
    ref = ref.reshape(batch, seq, in_dim)
    assert jnp.allclose(y, ref, atol=1e-5, rtol=1e-5), "mismatch (resident f32)"

    # --- Test 2: forced H-tiled accumulation path (2 hidden tiles), f32 -----
    b2_, s2_, d2_, h2_ = 2, 64, 128, 512
    xb = jax.random.normal(k_x2, (b2_, s2_, d2_), jnp.float32)
    w1b, b1b = init_linear(k_l3, d2_, h2_)
    w2b, b2b = init_linear(k_l4, h2_, d2_)

    y2 = feed_forward(xb, w1b, b1b, w2b, b2b, compute_dtype=jnp.float32,
                      force_h_tiling=True, th=256)
    jax.block_until_ready(y2)
    ref2 = (jnp.maximum(xb.reshape(-1, d2_) @ w1b + b1b, 0.0) @ w2b + b2b)
    ref2 = ref2.reshape(b2_, s2_, d2_)
    assert jnp.allclose(y2, ref2, atol=2e-3, rtol=2e-3), "mismatch (H-tiled f32)"

    # --- Test 3: default bf16 compute + hoisted (prepared) params -----------
    params = prepare_ffn_params(w1b, b1b, w2b, b2b)          # bf16 by default
    y3 = feed_forward_prepared(xb, params)
    jax.block_until_ready(y3)
    assert jnp.allclose(y3, ref2, atol=5e-2, rtol=5e-2), "mismatch (bf16 compute)"

    print("KERNEL_OK")
</pallas_src>

<mosaic_0001>
module attributes {stable_mosaic.version = 11 : i64} {
  func.func @_ffn_resident_kernel(%arg0: i32, %arg1: memref<16x128xf32, #tpu.memory_space<vmem>>, %arg2: memref<128x128xf32, #tpu.memory_space<vmem>>, %arg3: memref<1x128xf32, #tpu.memory_space<vmem>>, %arg4: memref<128x128xf32, #tpu.memory_space<vmem>>, %arg5: memref<1x128xf32, #tpu.memory_space<vmem>>, %arg6: memref<16x128xf32, #tpu.memory_space<vmem>>) attributes {dimension_semantics = [#tpu.dimension_semantics<parallel>], iteration_bounds = array<i64: 1>, scalar_prefetch = 0 : i64, scratch_operands = 0 : i64, tpu.core_type = #tpu.core_type<tc>, window_params = [{transform_indices = @transform_0, window_bounds = array<i64: 16, 128>}, {pipeline_mode = #tpu.pipeline_mode<synchronous>, transform_indices = @transform_1, window_bounds = array<i64: 128, 128>}, {pipeline_mode = #tpu.pipeline_mode<synchronous>, transform_indices = @transform_2, window_bounds = array<i64: 1, 128>}, {pipeline_mode = #tpu.pipeline_mode<synchronous>, transform_indices = @transform_3, window_bounds = array<i64: 128, 128>}, {pipeline_mode = #tpu.pipeline_mode<synchronous>, transform_indices = @transform_4, window_bounds = array<i64: 1, 128>}, {transform_indices = @transform_5, window_bounds = array<i64: 16, 128>}]} {
    %c0 = arith.constant 0 : index
    %c0_0 = arith.constant 0 : index
    %0 = vector.load %arg1[%c0, %c0_0] : memref<16x128xf32, #tpu.memory_space<vmem>>, vector<16x128xf32>
    %c0_1 = arith.constant 0 : index
    %c0_2 = arith.constant 0 : index
    %1 = vector.load %arg2[%c0_1, %c0_2] : memref<128x128xf32, #tpu.memory_space<vmem>>, vector<128x128xf32>
    %cst = arith.constant dense<0.000000e+00> : vector<16x128xf32>
    %2 = tpu.matmul %0, %1, %cst {dimension_numbers = #tpu.dot_dimension_numbers<[1], [0], [0], [1], [0, 0, 1, 1], [], []>} : vector<16x128xf32>, vector<128x128xf32>, vector<16x128xf32> -> vector<16x128xf32>
    %c0_3 = arith.constant 0 : index
    %c0_4 = arith.constant 0 : index
    %3 = vector.load %arg3[%c0_3, %c0_4] : memref<1x128xf32, #tpu.memory_space<vmem>>, vector<1x128xf32>
    %4 = vector.broadcast %3 : vector<1x128xf32> to vector<16x128xf32>
    %5 = arith.addf %2, %4 : vector<16x128xf32>
    %cst_5 = arith.constant 0.000000e+00 : f32
    %6 = vector.broadcast %cst_5 : f32 to vector<16x128xf32>
    %7 = arith.maximumf %5, %6 : vector<16x128xf32>
    %c0_6 = arith.constant 0 : index
    %c0_7 = arith.constant 0 : index
    %8 = vector.load %arg4[%c0_6, %c0_7] : memref<128x128xf32, #tpu.memory_space<vmem>>, vector<128x128xf32>
    %cst_8 = arith.constant dense<0.000000e+00> : vector<16x128xf32>
    %9 = tpu.matmul %7, %8, %cst_8 {dimension_numbers = #tpu.dot_dimension_numbers<[1], [0], [0], [1], [0, 0, 1, 1], [], []>} : vector<16x128xf32>, vector<128x128xf32>, vector<16x128xf32> -> vector<16x128xf32>
    %c0_9 = arith.constant 0 : index
    %c0_10 = arith.constant 0 : index
    %10 = vector.load %arg5[%c0_9, %c0_10] : memref<1x128xf32, #tpu.memory_space<vmem>>, vector<1x128xf32>
    %11 = vector.broadcast %10 : vector<1x128xf32> to vector<16x128xf32>
    %12 = arith.addf %9, %11 : vector<16x128xf32>
    %c0_11 = arith.constant 0 : index
    %c0_12 = arith.constant 0 : index
    %13 = vector.load %arg6[%c0_11, %c0_12] : memref<16x128xf32, #tpu.memory_space<vmem>>, vector<16x128xf32>
    tpu.vector_store %arg6[%c0_11, %c0_12], %12 {strides = array<i32>} : memref<16x128xf32, #tpu.memory_space<vmem>>, vector<16x128xf32>,
    return
  }
  func.func @transform_0(%arg0: i32) -> (i32, i32) {
    %c0_i32 = arith.constant 0 : i32
    %c0_i32_0 = arith.constant 0 : i32
    return %arg0, %c0_i32 : i32, i32
  }
  func.func @transform_1(%arg0: i32) -> (i32, i32) {
    %c0_i32 = arith.constant 0 : i32
    %c0_i32_0 = arith.constant 0 : i32
    %c0_i32_1 = arith.constant 0 : i32
    return %c0_i32, %c0_i32_0 : i32, i32
  }
  func.func @transform_2(%arg0: i32) -> (i32, i32) {
    %c0_i32 = arith.constant 0 : i32
    %c0_i32_0 = arith.constant 0 : i32
    %c0_i32_1 = arith.constant 0 : i32
    return %c0_i32, %c0_i32_0 : i32, i32
  }
  func.func @transform_3(%arg0: i32) -> (i32, i32) {
    %c0_i32 = arith.constant 0 : i32
    %c0_i32_0 = arith.constant 0 : i32
    %c0_i32_1 = arith.constant 0 : i32
    return %c0_i32, %c0_i32_0 : i32, i32
  }
  func.func @transform_4(%arg0: i32) -> (i32, i32) {
    %c0_i32 = arith.constant 0 : i32
    %c0_i32_0 = arith.constant 0 : i32
    %c0_i32_1 = arith.constant 0 : i32
    return %c0_i32, %c0_i32_0 : i32, i32
  }
  func.func @transform_5(%arg0: i32) -> (i32, i32) {
    %c0_i32 = arith.constant 0 : i32
    %c0_i32_0 = arith.constant 0 : i32
    return %arg0, %c0_i32 : i32, i32
  }
}

module attributes {stable_mosaic.version = 11 : i64} {
  func.func @_ffn_resident_kernel(%arg0: i32, %arg1: memref<16x128xf32, #tpu.memory_space<vmem>>, %arg2: memref<128x128xf32, #tpu.memory_space<vmem>>, %arg3: memref<1x128xf32, #tpu.memory_space<vmem>>, %arg4: memref<128x128xf32, #tpu.memory_space<vmem>>, %arg5: memref<1x128xf32, #tpu.memory_space<vmem>>, %arg6: memref<16x128xf32, #tpu.memory_space<vmem>>) attributes {dimension_semantics = [#tpu.dimension_semantics<parallel>], iteration_bounds = array<i64: 1>, scalar_prefetch = 0 : i64, scratch_operands = 0 : i64, tpu.core_type = #tpu.core_type<tc>, window_params = [{transform_indices = @transform_0, window_bounds = array<i64: 16, 128>}, {pipeline_mode = #tpu.pipeline_mode<synchronous>, transform_indices = @transform_1, window_bounds = array<i64: 128, 128>}, {pipeline_mode = #tpu.pipeline_mode<synchronous>, transform_indices = @transform_2, window_bounds = array<i64: 1, 128>}, {pipeline_mode = #tpu.pipeline_mode<synchronous>, transform_indices = @transform_3, window_bounds = array<i64: 128, 128>}, {pipeline_mode = #tpu.pipeline_mode<synchronous>, transform_indices = @transform_4, window_bounds = array<i64: 1, 128>}, {transform_indices = @transform_5, window_bounds = array<i64: 16, 128>}]} {
    %c0 = arith.constant 0 : index
    %c0_0 = arith.constant 0 : index
    %0 = vector.load %arg1[%c0, %c0_0] : memref<16x128xf32, #tpu.memory_space<vmem>>, vector<16x128xf32>
    %c0_1 = arith.constant 0 : index
    %c0_2 = arith.constant 0 : index
    %1 = vector.load %arg2[%c0_1, %c0_2] : memref<128x128xf32, #tpu.memory_space<vmem>>, vector<128x128xf32>
    %cst = arith.constant dense<0.000000e+00> : vector<16x128xf32>
    %2 = tpu.matmul %0, %1, %cst {dimension_numbers = #tpu.dot_dimension_numbers<[1], [0], [0], [1], [0, 0, 1, 1], [], []>} : vector<16x128xf32>, vector<128x128xf32>, vector<16x128xf32> -> vector<16x128xf32>
    %c0_3 = arith.constant 0 : index
    %c0_4 = arith.constant 0 : index
    %3 = vector.load %arg3[%c0_3, %c0_4] : memref<1x128xf32, #tpu.memory_space<vmem>>, vector<1x128xf32>
    %4 = vector.broadcast %3 : vector<1x128xf32> to vector<16x128xf32>
    %5 = arith.addf %2, %4 : vector<16x128xf32>
    %cst_5 = arith.constant 0.000000e+00 : f32
    %6 = vector.broadcast %cst_5 : f32 to vector<16x128xf32>
    %7 = arith.maximumf %5, %6 : vector<16x128xf32>
    %c0_6 = arith.constant 0 : index
    %c0_7 = arith.constant 0 : index
    %8 = vector.load %arg4[%c0_6, %c0_7] : memref<128x128xf32, #tpu.memory_space<vmem>>, vector<128x128xf32>
    %cst_8 = arith.constant dense<0.000000e+00> : vector<16x128xf32>
    %9 = tpu.matmul %7, %8, %cst_8 {dimension_numbers = #tpu.dot_dimension_numbers<[1], [0], [0], [1], [0, 0, 1, 1], [], []>} : vector<16x128xf32>, vector<128x128xf32>, vector<16x128xf32> -> vector<16x128xf32>
    %c0_9 = arith.constant 0 : index
    %c0_10 = arith.constant 0 : index
    %10 = vector.load %arg5[%c0_9, %c0_10] : memref<1x128xf32, #tpu.memory_space<vmem>>, vector<1x128xf32>
    %11 = vector.broadcast %10 : vector<1x128xf32> to vector<16x128xf32>
    %12 = arith.addf %9, %11 : vector<16x128xf32>
    %c0_11 = arith.constant 0 : index
    %c0_12 = arith.constant 0 : index
    %13 = vector.load %arg6[%c0_11, %c0_12] : memref<16x128xf32, #tpu.memory_space<vmem>>, vector<16x128xf32>
    tpu.vector_store %arg6[%c0_11, %c0_12], %12 {strides = array<i32>} : memref<16x128xf32, #tpu.memory_space<vmem>>, vector<16x128xf32>,
    return
  }
  func.func @transform_0(%arg0: i32) -> (i32, i32) {
    %c0_i32 = arith.constant 0 : i32
    %c0_i32_0 = arith.constant 0 : i32
    return %arg0, %c0_i32 : i32, i32
  }
  func.func @transform_1(%arg0: i32) -> (i32, i32) {
    %c0_i32 = arith.constant 0 : i32
    %c0_i32_0 = arith.constant 0 : i32
    %c0_i32_1 = arith.constant 0 : i32
    return %c0_i32, %c0_i32_0 : i32, i32
  }
  func.func @transform_2(%arg0: i32) -> (i32, i32) {
    %c0_i32 = arith.constant 0 : i32
    %c0_i32_0 = arith.constant 0 : i32
    %c0_i32_1 = arith.constant 0 : i32
    return %c0_i32, %c0_i32_0 : i32, i32
  }
  func.func @transform_3(%arg0: i32) -> (i32, i32) {
    %c0_i32 = arith.constant 0 : i32
    %c0_i32_0 = arith.constant 0 : i32
    %c0_i32_1 = arith.constant 0 : i32
    return %c0_i32, %c0_i32_0 : i32, i32
  }
  func.func @transform_4(%arg0: i32) -> (i32, i32) {
    %c0_i32 = arith.constant 0 : i32
    %c0_i32_0 = arith.constant 0 : i32
    %c0_i32_1 = arith.constant 0 : i32
    return %c0_i32, %c0_i32_0 : i32, i32
  }
  func.func @transform_5(%arg0: i32) -> (i32, i32) {
    %c0_i32 = arith.constant 0 : i32
    %c0_i32_0 = arith.constant 0 : i32
    return %arg0, %c0_i32 : i32, i32
  }
}

</mosaic_0001>

<bundles_post_ra>
// kernel: tpu_custom_call.1
= control target key start
LH: loop header
LB: loop body
LE: loop exit
PB: predicated region body
PF: predicated region fallthrough
CT: control target
= control target key end

     0   :  { %10 = vsyncpa [#allocation3], 0  ;;  %s388_s0 = inlined_call_operand.hbm [shape: f32[16,128], index: 0, kind: input, shape index: {}]   ;;  %s389_s1 = inlined_call_operand.hbm [shape: f32[128,128], index: 1, kind: input, shape index: {}]   ;;  %s390_s2 = inlined_call_operand.vmem [shape: f32[1,128], index: 2, kind: input, shape index: {}]   ;;  %s391_s3 = inlined_call_operand.hbm [shape: f32[128,128], index: 3, kind: input, shape index: {}]   ;;  %s392_s4 = inlined_call_operand.vmem [shape: f32[1,128], index: 4, kind: input, shape index: {}]   ;;  %s393_s5 = inlined_call_operand.hbm [shape: f32[16,128], index: 5, kind: output, shape index: {}]  }
   0x1   :  { %11 = vsyncpa [#allocation6], 0 }
   0x2   :  { %12 = vsyncpa [#allocation4], 0  ;;  %s30_s20 = sshll.u32 %s389_s1, 4  ;;  %s322_s21 = smov [#allocation5]   ;;  %s31_s20 = int_to_ptr.hbm [resolvable:$true] %s30_s20 }
   0x3   :  { %s32_s22 = sshll.u32 %s322_s21, 4  ;;  %s17_s25 = sshll.u32 %s388_s0, 4  ;;  %s33_s22 = int_to_ptr.vmem [resolvable:$true] %s32_s22  ;;  %s18_s25 = int_to_ptr.hbm [resolvable:$true] %s17_s25 }
   0x4   :  { %s323_s26 = smov 128   ;;  %s324_s27 = smov 8  }
   0x5   :  { %38 = dma.hbm_to_vmem [thread:$0]  %s31_s20, 2048, %s33_s22, [#allocation6], %s323_s26, %s323_s26, %s324_s27  }
   0x6   :  { %s325_s28 = smov [#allocation2]   ;;  %s45_s1 = sshll.u32 %s391_s3, 4  ;;  %s46_s1 = int_to_ptr.hbm [resolvable:$true] %s45_s1 }
   0x7   :  { %s19_s29 = sshll.u32 %s325_s28, 4  ;;  %s326_s0 = smov [#allocation7]   ;;  %s20_s29 = int_to_ptr.vmem [resolvable:$true] %s19_s29 }
   0x8   :  { %25 = dma.hbm_to_vmem [thread:$0]  %s18_s25, 256, %s20_s29, [#allocation3], %s323_s26, %s323_s26, %s324_s27  }
   0x9   :  { %s47_s7 = sshll.u32 %s326_s0, 4  ;;  %s48_s7 = int_to_ptr.vmem [resolvable:$true] %s47_s7 }
   0xa   :  { %53 = dma.hbm_to_vmem [thread:$0]  %s46_s1, 2048, %s48_s7, [#allocation6], %s323_s26, %s323_s26, %s324_s27  }
   0xb   :  { %316 = dma.done.wait [#allocation3], 256  }
   0xc   :  { %317 = vsyncadd [#allocation3], 4294967040 }
   0xd   :  { %318 = dma.done.wait [#allocation6], 4096  }
   0xe   :  { %319 = vsyncadd [#allocation6], 4294963200  ;;  %v85_v0 = vld [vmem:[#allocation5 + $0x78] sm:$0xff]  ;;  %v84_v1 = vld [vmem:[#allocation5 + $0x70] sm:$0xff]  ;;  %s327_s11 = smov [#allocation8]  }
   0xf   :  { %180 = vmatpush.msra.mxu2 %v85_v0  ;;  %90 = vmatpush.msra.mxu0 %v85_v0  ;;  %v83_v2 = vld [vmem:[#allocation5 + $0x68] sm:$0xff]  ;;  %v82_v3 = vld [vmem:[#allocation5 + $0x60] sm:$0xff]  ;;  %v81_v4 = vld [vmem:[#allocation5 + $0x58] sm:$0xff]  ;;  %s164_s12 = sshll.u32 %s327_s11, 4  ;;  %s165_s12 = int_to_ptr.vmem [resolvable:$true] %s164_s12 }
  0x10   :  { %v130_v5 = vld [vmem:[#allocation7 + $0x78] sm:$0xff]  ;;  %v129_v6 = vld [vmem:[#allocation7 + $0x70] sm:$0xff]  ;;  %v128_v8 = vld [vmem:[#allocation7 + $0x68] sm:$0xff] }
  0x11   :  { %181 = vmatpush.msra.mxu2 %v84_v1  ;;  %91 = vmatpush.msra.mxu0 %v84_v1  ;;  %v80_v7 = vld [vmem:[#allocation5 + $0x50] sm:$0xff]  ;;  %v79_v9 = vld [vmem:[#allocation5 + $0x48] sm:$0xff]  ;;  %v127_v10 = vld [vmem:[#allocation7 + $0x60] sm:$0xff] }
  0x12   :  { %196 = vmatpush.msra.mxu3 %v130_v5  ;;  %135 = vmatpush.msra.mxu1 %v130_v5  ;;  %v78_v11 = vld [vmem:[#allocation5 + $0x40] sm:$0xff]  ;;  %v126_v12 = vld [vmem:[#allocation7 + $0x58] sm:$0xff]  ;;  %v125_v14 = vld [vmem:[#allocation7 + $0x50] sm:$0xff] }
  0x13   :  { %182 = vmatpush.msra.mxu2 %v83_v2  ;;  %92 = vmatpush.msra.mxu0 %v83_v2  ;;  %v77_v13 = vld [vmem:[#allocation5 + $0x38] sm:$0xff]  ;;  %v76_v15 = vld [vmem:[#allocation5 + $0x30] sm:$0xff]  ;;  %v124_v16 = vld [vmem:[#allocation7 + $0x48] sm:$0xff] }
  0x14   :  { %197 = vmatpush.msra.mxu3 %v129_v6  ;;  %136 = vmatpush.msra.mxu1 %v129_v6  ;;  %v75_v17 = vld [vmem:[#allocation5 + $0x28] sm:$0xff]  ;;  %v123_v18 = vld [vmem:[#allocation7 + $0x40] sm:$0xff]  ;;  %v122_v20 = vld [vmem:[#allocation7 + $0x38] sm:$0xff] }
  0x15   :  { %183 = vmatpush.msra.mxu2 %v82_v3  ;;  %93 = vmatpush.msra.mxu0 %v82_v3  ;;  %v74_v19 = vld [vmem:[#allocation5 + $0x20] sm:$0xff]  ;;  %v73_v21 = vld [vmem:[#allocation5 + $0x18] sm:$0xff]  ;;  %v121_v22 = vld [vmem:[#allocation7 + $0x30] sm:$0xff] }
  0x16   :  { %198 = vmatpush.msra.mxu3 %v128_v8  ;;  %137 = vmatpush.msra.mxu1 %v128_v8  ;;  %v72_v23 = vld [vmem:[#allocation5 + $0x10] sm:$0xff]  ;;  %v120_v24 = vld [vmem:[#allocation7 + $0x28] sm:$0xff]  ;;  %v119_v26 = vld [vmem:[#allocation7 + $0x20] sm:$0xff] }
  0x17   :  { %184 = vmatpush.msra.mxu2 %v81_v4  ;;  %94 = vmatpush.msra.mxu0 %v81_v4  ;;  %v71_v25 = vld [vmem:[#allocation5 + $0x8] sm:$0xff]  ;;  %v70_v27 = vld [vmem:[#allocation5] sm:$0xff]  ;;  %v69_v28 = vld [vmem:[#allocation2 + $0x8] sm:$0xff] }
  0x18   :  { %199 = vmatpush.msra.mxu3 %v127_v10  ;;  %138 = vmatpush.msra.mxu1 %v127_v10  ;;  %v68_v29 = vld [vmem:[#allocation2] sm:$0xff]  ;;  %v118_v30 = vld [vmem:[#allocation7 + $0x18] sm:$0xff]  ;;  %v116_v32 = vld [vmem:[#allocation7 + $0x8] sm:$0xff] }
  0x19   :  { %185 = vmatpush.msra.mxu2 %v80_v7  ;;  %95 = vmatpush.msra.mxu0 %v80_v7  ;;  %v117_v31 = vld [vmem:[#allocation7 + $0x10] sm:$0xff]  ;;  %v115_v33 = vld [vmem:[#allocation7] sm:$0xff] }
  0x1a   :  { %200 = vmatpush.msra.mxu3 %v126_v12  ;;  %139 = vmatpush.msra.mxu1 %v126_v12  ;;  %v218_v34 = vld [vmem:[%s390_s2] ss:$0 sm:$0xff]  ;;  %s166_s2 = sshll.u32 %s393_s5, 4  ;;  %s167_s2 = int_to_ptr.hbm [resolvable:$true] %s166_s2 }
  0x1b   :  { %186 = vmatpush.msra.mxu2 %v79_v9  ;;  %96 = vmatpush.msra.mxu0 %v79_v9  ;;  %v219_v41 = vld [vmem:[%s392_s4] ss:$0 sm:$0xff] }
  0x1c   :  { %201 = vmatpush.msra.mxu3 %v125_v14  ;;  %140 = vmatpush.msra.mxu1 %v125_v14 }
  0x1d   :  { %187 = vmatpush.msra.mxu2 %v78_v11  ;;  %97 = vmatpush.msra.mxu0 %v78_v11 }
  0x1e   :  { %202 = vmatpush.msra.mxu3 %v124_v16  ;;  %141 = vmatpush.msra.mxu1 %v124_v16 }
  0x1f   :  { %188 = vmatpush.msra.mxu2 %v77_v13  ;;  %98 = vmatpush.msra.mxu0 %v77_v13 }
  0x20   :  { %203 = vmatpush.msra.mxu3 %v123_v18  ;;  %142 = vmatpush.msra.mxu1 %v123_v18 }
  0x21   :  { %189 = vmatpush.msra.mxu2 %v76_v15  ;;  %99 = vmatpush.msra.mxu0 %v76_v15 }
  0x22   :  { %204 = vmatpush.msra.mxu3 %v122_v20  ;;  %143 = vmatpush.msra.mxu1 %v122_v20 }
  0x23   :  { %190 = vmatpush.msra.mxu2 %v75_v17  ;;  %100 = vmatpush.msra.mxu0 %v75_v17 }
  0x24   :  { %205 = vmatpush.msra.mxu3 %v121_v22  ;;  %144 = vmatpush.msra.mxu1 %v121_v22 }
  0x25   :  { %191 = vmatpush.msra.mxu2 %v74_v19  ;;  %101 = vmatpush.msra.mxu0 %v74_v19 }
  0x26   :  { %206 = vmatpush.msra.mxu3 %v120_v24  ;;  %145 = vmatpush.msra.mxu1 %v120_v24 }
  0x27   :  { %192 = vmatpush.msra.mxu2 %v73_v21  ;;  %102 = vmatpush.msra.mxu0 %v73_v21 }
  0x28   :  { %207 = vmatpush.msra.mxu3 %v119_v26  ;;  %146 = vmatpush.msra.mxu1 %v119_v26 }
  0x29   :  { %193 = vmatpush.msra.mxu2 %v72_v23  ;;  %103 = vmatpush.msra.mxu0 %v72_v23 }
  0x2a   :  { %208 = vmatpush.msra.mxu3 %v118_v30  ;;  %147 = vmatpush.msra.mxu1 %v118_v30 }
  0x2b   :  { %194 = vmatpush.msra.mxu2 %v71_v25  ;;  %104 = vmatpush.msra.mxu0 %v71_v25 }
  0x2c   :  { %209 = vmatpush.msra.mxu3 %v117_v31  ;;  %148 = vmatpush.msra.mxu1 %v117_v31 }
  0x2d   :  { %195 = vmatpush.msra.mxu2 %v70_v27  ;;  %105 = vmatpush.msra.mxu0 %v70_v27 }
  0x2e   :  { %109 = vmatmul.f32.vlgmr.msra.gmra.mxu2 %v69_v28  ;;  %106 = vmatmul.f32.vlgmr.msra.gmra.mxu0 %v68_v29 }
  0x2f   :  { %210 = vmatpush.msra.mxu3 %v116_v32  ;;  %149 = vmatpush.msra.mxu1 %v116_v32 }
  0x31   :  { %211 = vmatpush.msra.mxu3 %v115_v33  ;;  %150 = vmatpush.msra.mxu1 %v115_v33 }
  0xab   :  { %v107_v35 = vpop.f32.mrf.mxu0 }
  0xac   :  { %v108_v36 = vadd.f32 %v218_v34, %v107_v35 }
  0xae   :  { %v113_v37 = vmax.f32 %v108_v36, 0.0 }
  0xb0   :  { %151 = vmatmul.f32.vlgmr.msra.gmra.mxu1 %v113_v37 }
  0xb1   :  { %v110_v38 = vpop.f32.mrf.mxu2 }
  0xb2   :  { %v111_v39 = vadd.f32 %v218_v34, %v110_v38 }
  0xb4   :  { %v114_v40 = vmax.f32 %v111_v39, 0.0 }
  0xb6   :  { %154 = vmatmul.f32.vlgmr.msra.gmra.mxu3 %v114_v40 }
 0x12d   :  { %v152_v42 = vpop.f32.mrf.mxu1 }
 0x12e   :  { %v153_v43 = vadd.f32 %v219_v41, %v152_v42 }
 0x130   :  { %158 = vst [vmem:[#allocation8] sm:$0xff] %v153_v43 }
 0x139   :  { %v155_v44 = vpop.f32.mrf.mxu3 }
 0x13a   :  { %v156_v45 = vadd.f32 %v219_v41, %v155_v44 }
 0x13c   :  { %159 = vst [vmem:[#allocation8 + $0x8] sm:$0xff] %v156_v45 }
 0x13d   :  { %172 = dma.vmem_to_hbm [thread:$0]  %s165_s12, 256, %s167_s2, [#allocation4], %s323_s26, %s323_s26, %s324_s27  }
 0x13e   :  { %320 = dma.done.wait [#allocation4], 256  }
 0x13f   :  { %321 = vsyncadd [#allocation4], 4294967040 }
 0x140   :  { %177 = vsyncpa [#allocation3], 1 }
 0x141   :  { %178 = vsyncpa [#allocation6], 1 }
 0x142   :  { %179 = vsyncpa [#allocation4], 1 }

// kernel: tpu_custom_call.1
= control target key start
LH: loop header
LB: loop body
LE: loop exit
PB: predicated region body
PF: predicated region fallthrough
CT: control target
= control target key end

     0   :  { %10 = vsyncpa [#allocation3], 0  ;;  %s388_s0 = inlined_call_operand.hbm [shape: f32[16,128], index: 0, kind: input, shape index: {}]   ;;  %s389_s1 = inlined_call_operand.hbm [shape: f32[128,128], index: 1, kind: input, shape index: {}]   ;;  %s390_s2 = inlined_call_operand.vmem [shape: f32[1,128], index: 2, kind: input, shape index: {}]   ;;  %s391_s3 = inlined_call_operand.hbm [shape: f32[128,128], index: 3, kind: input, shape index: {}]   ;;  %s392_s4 = inlined_call_operand.vmem [shape: f32[1,128], index: 4, kind: input, shape index: {}]   ;;  %s393_s5 = inlined_call_operand.hbm [shape: f32[16,128], index: 5, kind: output, shape index: {}]  }
   0x1   :  { %11 = vsyncpa [#allocation6], 0 }
   0x2   :  { %12 = vsyncpa [#allocation4], 0  ;;  %s30_s20 = sshll.u32 %s389_s1, 4  ;;  %s322_s21 = smov [#allocation5]   ;;  %s31_s20 = int_to_ptr.hbm [resolvable:$true] %s30_s20 }
   0x3   :  { %s32_s22 = sshll.u32 %s322_s21, 4  ;;  %s17_s25 = sshll.u32 %s388_s0, 4  ;;  %s33_s22 = int_to_ptr.vmem [resolvable:$true] %s32_s22  ;;  %s18_s25 = int_to_ptr.hbm [resolvable:$true] %s17_s25 }
   0x4   :  { %s323_s26 = smov 128   ;;  %s324_s27 = smov 8  }
   0x5   :  { %38 = dma.hbm_to_vmem [thread:$0]  %s31_s20, 2048, %s33_s22, [#allocation6], %s323_s26, %s323_s26, %s324_s27  }
   0x6   :  { %s325_s28 = smov [#allocation2]   ;;  %s45_s1 = sshll.u32 %s391_s3, 4  ;;  %s46_s1 = int_to_ptr.hbm [resolvable:$true] %s45_s1 }
   0x7   :  { %s19_s29 = sshll.u32 %s325_s28, 4  ;;  %s326_s0 = smov [#allocation7]   ;;  %s20_s29 = int_to_ptr.vmem [resolvable:$true] %s19_s29 }
   0x8   :  { %25 = dma.hbm_to_vmem [thread:$0]  %s18_s25, 256, %s20_s29, [#allocation3], %s323_s26, %s323_s26, %s324_s27  }
   0x9   :  { %s47_s7 = sshll.u32 %s326_s0, 4  ;;  %s48_s7 = int_to_ptr.vmem [resolvable:$true] %s47_s7 }
   0xa   :  { %53 = dma.hbm_to_vmem [thread:$0]  %s46_s1, 2048, %s48_s7, [#allocation6], %s323_s26, %s323_s26, %s324_s27  }
   0xb   :  { %316 = dma.done.wait [#allocation3], 256  }
   0xc   :  { %317 = vsyncadd [#allocation3], 4294967040 }
   0xd   :  { %318 = dma.done.wait [#allocation6], 4096  }
   0xe   :  { %319 = vsyncadd [#allocation6], 4294963200  ;;  %v85_v0 = vld [vmem:[#allocation5 + $0x78] sm:$0xff]  ;;  %v84_v1 = vld [vmem:[#allocation5 + $0x70] sm:$0xff]  ;;  %s327_s11 = smov [#allocation8]  }
   0xf   :  { %180 = vmatpush.msra.mxu2 %v85_v0  ;;  %90 = vmatpush.msra.mxu0 %v85_v0  ;;  %v83_v2 = vld [vmem:[#allocation5 + $0x68] sm:$0xff]  ;;  %v82_v3 = vld [vmem:[#allocation5 + $0x60] sm:$0xff]  ;;  %v81_v4 = vld [vmem:[#allocation5 + $0x58] sm:$0xff]  ;;  %s164_s12 = sshll.u32 %s327_s11, 4  ;;  %s165_s12 = int_to_ptr.vmem [resolvable:$true] %s164_s12 }
  0x10   :  { %v130_v5 = vld [vmem:[#allocation7 + $0x78] sm:$0xff]  ;;  %v129_v6 = vld [vmem:[#allocation7 + $0x70] sm:$0xff]  ;;  %v128_v8 = vld [vmem:[#allocation7 + $0x68] sm:$0xff] }
  0x11   :  { %181 = vmatpush.msra.mxu2 %v84_v1  ;;  %91 = vmatpush.msra.mxu0 %v84_v1  ;;  %v80_v7 = vld [vmem:[#allocation5 + $0x50] sm:$0xff]  ;;  %v79_v9 = vld [vmem:[#allocation5 + $0x48] sm:$0xff]  ;;  %v127_v10 = vld [vmem:[#allocation7 + $0x60] sm:$0xff] }
  0x12   :  { %196 = vmatpush.msra.mxu3 %v130_v5  ;;  %135 = vmatpush.msra.mxu1 %v130_v5  ;;  %v78_v11 = vld [vmem:[#allocation5 + $0x40] sm:$0xff]  ;;  %v126_v12 = vld [vmem:[#allocation7 + $0x58] sm:$0xff]  ;;  %v125_v14 = vld [vmem:[#allocation7 + $0x50] sm:$0xff] }
  0x13   :  { %182 = vmatpush.msra.mxu2 %v83_v2  ;;  %92 = vmatpush.msra.mxu0 %v83_v2  ;;  %v77_v13 = vld [vmem:[#allocation5 + $0x38] sm:$0xff]  ;;  %v76_v15 = vld [vmem:[#allocation5 + $0x30] sm:$0xff]  ;;  %v124_v16 = vld [vmem:[#allocation7 + $0x48] sm:$0xff] }
  0x14   :  { %197 = vmatpush.msra.mxu3 %v129_v6  ;;  %136 = vmatpush.msra.mxu1 %v129_v6  ;;  %v75_v17 = vld [vmem:[#allocation5 + $0x28] sm:$0xff]  ;;  %v123_v18 = vld [vmem:[#allocation7 + $0x40] sm:$0xff]  ;;  %v122_v20 = vld [vmem:[#allocation7 + $0x38] sm:$0xff] }
  0x15   :  { %183 = vmatpush.msra.mxu2 %v82_v3  ;;  %93 = vmatpush.msra.mxu0 %v82_v3  ;;  %v74_v19 = vld [vmem:[#allocation5 + $0x20] sm:$0xff]  ;;  %v73_v21 = vld [vmem:[#allocation5 + $0x18] sm:$0xff]  ;;  %v121_v22 = vld [vmem:[#allocation7 + $0x30] sm:$0xff] }
  0x16   :  { %198 = vmatpush.msra.mxu3 %v128_v8  ;;  %137 = vmatpush.msra.mxu1 %v128_v8  ;;  %v72_v23 = vld [vmem:[#allocation5 + $0x10] sm:$0xff]  ;;  %v120_v24 = vld [vmem:[#allocation7 + $0x28] sm:$0xff]  ;;  %v119_v26 = vld [vmem:[#allocation7 + $0x20] sm:$0xff] }
  0x17   :  { %184 = vmatpush.msra.mxu2 %v81_v4  ;;  %94 = vmatpush.msra.mxu0 %v81_v4  ;;  %v71_v25 = vld [vmem:[#allocation5 + $0x8] sm:$0xff]  ;;  %v70_v27 = vld [vmem:[#allocation5] sm:$0xff]  ;;  %v69_v28 = vld [vmem:[#allocation2 + $0x8] sm:$0xff] }
  0x18   :  { %199 = vmatpush.msra.mxu3 %v127_v10  ;;  %138 = vmatpush.msra.mxu1 %v127_v10  ;;  %v68_v29 = vld [vmem:[#allocation2] sm:$0xff]  ;;  %v118_v30 = vld [vmem:[#allocation7 + $0x18] sm:$0xff]  ;;  %v116_v32 = vld [vmem:[#allocation7 + $0x8] sm:$0xff] }
  0x19   :  { %185 = vmatpush.msra.mxu2 %v80_v7  ;;  %95 = vmatpush.msra.mxu0 %v80_v7  ;;  %v117_v31 = vld [vmem:[#allocation7 + $0x10] sm:$0xff]  ;;  %v115_v33 = vld [vmem:[#allocation7] sm:$0xff] }
  0x1a   :  { %200 = vmatpush.msra.mxu3 %v126_v12  ;;  %139 = vmatpush.msra.mxu1 %v126_v12  ;;  %v218_v34 = vld [vmem:[%s390_s2] ss:$0 sm:$0xff]  ;;  %s166_s2 = sshll.u32 %s393_s5, 4  ;;  %s167_s2 = int_to_ptr.hbm [resolvable:$true] %s166_s2 }
  0x1b   :  { %186 = vmatpush.msra.mxu2 %v79_v9  ;;  %96 = vmatpush.msra.mxu0 %v79_v9  ;;  %v219_v41 = vld [vmem:[%s392_s4] ss:$0 sm:$0xff] }
  0x1c   :  { %201 = vmatpush.msra.mxu3 %v125_v14  ;;  %140 = vmatpush.msra.mxu1 %v125_v14 }
  0x1d   :  { %187 = vmatpush.msra.mxu2 %v78_v11  ;;  %97 = vmatpush.msra.mxu0 %v78_v11 }
  0x1e   :  { %202 = vmatpush.msra.mxu3 %v124_v16  ;;  %141 = vmatpush.msra.mxu1 %v124_v16 }
  0x1f   :  { %188 = vmatpush.msra.mxu2 %v77_v13  ;;  %98 = vmatpush.msra.mxu0 %v77_v13 }
  0x20   :  { %203 = vmatpush.msra.mxu3 %v123_v18  ;;  %142 = vmatpush.msra.mxu1 %v123_v18 }
  0x21   :  { %189 = vmatpush.msra.mxu2 %v76_v15  ;;  %99 = vmatpush.msra.mxu0 %v76_v15 }
  0x22   :  { %204 = vmatpush.msra.mxu3 %v122_v20  ;;  %143 = vmatpush.msra.mxu1 %v122_v20 }
  0x23   :  { %190 = vmatpush.msra.mxu2 %v75_v17  ;;  %100 = vmatpush.msra.mxu0 %v75_v17 }
  0x24   :  { %205 = vmatpush.msra.mxu3 %v121_v22  ;;  %144 = vmatpush.msra.mxu1 %v121_v22 }
  0x25   :  { %191 = vmatpush.msra.mxu2 %v74_v19  ;;  %101 = vmatpush.msra.mxu0 %v74_v19 }
  0x26   :  { %206 = vmatpush.msra.mxu3 %v120_v24  ;;  %145 = vmatpush.msra.mxu1 %v120_v24 }
  0x27   :  { %192 = vmatpush.msra.mxu2 %v73_v21  ;;  %102 = vmatpush.msra.mxu0 %v73_v21 }
  0x28   :  { %207 = vmatpush.msra.mxu3 %v119_v26  ;;  %146 = vmatpush.msra.mxu1 %v119_v26 }
  0x29   :  { %193 = vmatpush.msra.mxu2 %v72_v23  ;;  %103 = vmatpush.msra.mxu0 %v72_v23 }
  0x2a   :  { %208 = vmatpush.msra.mxu3 %v118_v30  ;;  %147 = vmatpush.msra.mxu1 %v118_v30 }
  0x2b   :  { %194 = vmatpush.msra.mxu2 %v71_v25  ;;  %104 = vmatpush.msra.mxu0 %v71_v25 }
  0x2c   :  { %209 = vmatpush.msra.mxu3 %v117_v31  ;;  %148 = vmatpush.msra.mxu1 %v117_v31 }
  0x2d   :  { %195 = vmatpush.msra.mxu2 %v70_v27  ;;  %105 = vmatpush.msra.mxu0 %v70_v27 }
  0x2e   :  { %109 = vmatmul.f32.vlgmr.msra.gmra.mxu2 %v69_v28  ;;  %106 = vmatmul.f32.vlgmr.msra.gmra.mxu0 %v68_v29 }
  0x2f   :  { %210 = vmatpush.msra.mxu3 %v116_v32  ;;  %149 = vmatpush.msra.mxu1 %v116_v32 }
  0x31   :  { %211 = vmatpush.msra.mxu3 %v115_v33  ;;  %150 = vmatpush.msra.mxu1 %v115_v33 }
  0xab   :  { %v107_v35 = vpop.f32.mrf.mxu0 }
  0xac   :  { %v108_v36 = vadd.f32 %v218_v34, %v107_v35 }
  0xae   :  { %v113_v37 = vmax.f32 %v108_v36, 0.0 }
  0xb0   :  { %151 = vmatmul.f32.vlgmr.msra.gmra.mxu1 %v113_v37 }
  0xb1   :  { %v110_v38 = vpop.f32.mrf.mxu2 }
  0xb2   :  { %v111_v39 = vadd.f32 %v218_v34, %v110_v38 }
  0xb4   :  { %v114_v40 = vmax.f32 %v111_v39, 0.0 }
  0xb6   :  { %154 = vmatmul.f32.vlgmr.msra.gmra.mxu3 %v114_v40 }
 0x12d   :  { %v152_v42 = vpop.f32.mrf.mxu1 }
 0x12e   :  { %v153_v43 = vadd.f32 %v219_v41, %v152_v42 }
 0x130   :  { %158 = vst [vmem:[#allocation8] sm:$0xff] %v153_v43 }
 0x139   :  { %v155_v44 = vpop.f32.mrf.mxu3 }
 0x13a   :  { %v156_v45 = vadd.f32 %v219_v41, %v155_v44 }
 0x13c   :  { %159 = vst [vmem:[#allocation8 + $0x8] sm:$0xff] %v156_v45 }
 0x13d   :  { %172 = dma.vmem_to_hbm [thread:$0]  %s165_s12, 256, %s167_s2, [#allocation4], %s323_s26, %s323_s26, %s324_s27  }
 0x13e   :  { %320 = dma.done.wait [#allocation4], 256  }
 0x13f   :  { %321 = vsyncadd [#allocation4], 4294967040 }
 0x140   :  { %177 = vsyncpa [#allocation3], 1 }
 0x141   :  { %178 = vsyncpa [#allocation6], 1 }
 0x142   :  { %179 = vsyncpa [#allocation4], 1 }

</bundles_post_ra>
